<compile_context>
chip_gen: v6e
topology: v6e:2x2x1
jax: 0.10.0
libtpu: 0.0.40
codegen_flags: <defaults>
</compile_context>

<pallas_src>
import functools

import numpy as np
import jax
import jax.numpy as jnp
from jax import lax
from jax.experimental import pallas as pl
from jax.experimental.pallas import tpu as pltpu


def _round_up(x, m):
    return (x + m - 1) // m * m


def _physical_vmem_bytes():
    """Physical per-core VMEM; conservative fallback is the v7x 64 MiB."""
    try:
        info = pltpu.get_tpu_info()
        for name in ("vmem_capacity_bytes", "vmem_size_bytes", "vmem_bytes"):
            v = getattr(info, name, None)
            if v:
                return int(v)
    except Exception:
        pass
    return 64 << 20


def _mixmatch_kernel(xout_ref, xtgt_ref, uout_ref, utgt_ref, part_ref, *,
                     batch, tile_b, mask_rows):
    i = pl.program_id(0)

    # ---- Lx partial: sum_{rows,c}( log_softmax(x)[r,c] * xtarget[r,c] ) ----
    x = xout_ref[...].astype(jnp.float32)
    xt = xtgt_ref[...].astype(jnp.float32)
    x_max = jnp.max(x, axis=1, keepdims=True)
    x_shift = x - x_max
    lse = jnp.log(jnp.sum(jnp.exp(x_shift), axis=1, keepdims=True))
    prod = (x_shift - lse) * xt

    # ---- Lu partial: sum_{rows,c}( (softmax(u)[r,c] - utarget[r,c])^2 ) ----
    u = uout_ref[...].astype(jnp.float32)
    ut = utgt_ref[...].astype(jnp.float32)
    u_max = jnp.max(u, axis=1, keepdims=True)
    u_exp = jnp.exp(u - u_max)
    # approx=True was evaluated (review item): the denominator is a per-row
    # (tile_b, 1) quantity, so the EUP saving is negligible while the exact
    # reciprocal keeps the 1e-6 Lu tolerance vs the reference.
    inv_den = pl.reciprocal(jnp.sum(u_exp, axis=1, keepdims=True), approx=False)
    diff = u_exp * inv_den - ut

    # Partial-tile masking, emitted only when B % tile_b != 0 and only on the
    # two product terms. Row reductions above are per-row (keepdims), so any
    # garbage in padded rows stays confined to those rows and is zeroed here.
    if mask_rows:
        rows = lax.broadcasted_iota(jnp.int32, (tile_b, 1), 0) + i * tile_b
        valid = rows < batch
        prod = jnp.where(valid, prod, 0.0)
        diff = jnp.where(valid, diff, 0.0)

    lx_part = jnp.sum(prod)
    lu_part = jnp.sum(diff * diff)

    # Per-tile partial sums: sublane 0 carries the Lx partial, sublane 1 the
    # Lu partial. A lane-dense (8, 128) slab keeps the output store unmasked.
    sub = lax.broadcasted_iota(jnp.int32, (8, 128), 0)
    part_ref[0] = jnp.where(sub == 0, lx_part,
                            jnp.where(sub == 1, lu_part, 0.0))


def _mixmatch_loss_terms(xoutput, xtarget, uoutput, utarget, max_tile_rows=None):
    B, C = xoutput.shape
    itemsize = max(np.dtype(a.dtype).itemsize
                   for a in (xoutput, xtarget, uoutput, utarget))

    # VMEM is (8,128)-tiled: a (tile_b, C) block with C < 128 occupies
    # round_up(C, 128) lanes worth of VMEM (4x padding for C=32).
    c_pad = _round_up(C, 128)

    # Per-generation scoped-VMEM clamp: ~40 MiB on 64-MiB parts (v7x per-core
    # VMEM), ~56 MiB on 128-MiB parts (v5e/v6e) for larger double-buffered
    # tiles there.
    phys_vmem = _physical_vmem_bytes()
    vmem_limit = (40 << 20) if phys_vmem <= (64 << 20) else (56 << 20)

    # Byte-based tile sizing (no fixed row cap). Per row of the tile:
    #   * 4 inputs x 2 pipeline buffers at lane-padded width, input dtype;
    #   * ~12 tile-sized f32 temporaries (upcasts, exp, log_prob, diff and the
    #     lane-padded keepdims rows) living in compiler VMEM scratch.
    bytes_per_row = 4 * 2 * c_pad * itemsize + 12 * c_pad * 4
    budget = vmem_limit - (4 << 20)           # headroom for misc scratch
    tile_b = budget // bytes_per_row
    if max_tile_rows is not None:
        tile_b = min(tile_b, max_tile_rows)
    tile_b = max(8, tile_b)
    if tile_b >= B:
        tile_b = B                            # full batch axis: always legal
    else:
        tile_b = (tile_b // 8) * 8            # (8,128) second-minor rule

    num_tiles = (B + tile_b - 1) // tile_b
    mask_rows = (B % tile_b) != 0

    in_spec = pl.BlockSpec((tile_b, C), lambda i: (i, 0))
    out_spec = pl.BlockSpec((1, 8, 128), lambda i: (i, 0, 0))

    cost = pl.CostEstimate(
        flops=10 * B * C,
        transcendentals=2 * B * C,
        bytes_accessed=4 * B * C * itemsize + num_tiles * 8 * 128 * 4,
    )

    kernel = functools.partial(_mixmatch_kernel, batch=B, tile_b=tile_b,
                               mask_rows=mask_rows)
    parts = pl.pallas_call(
        kernel,
        out_shape=jax.ShapeDtypeStruct((num_tiles, 8, 128), jnp.float32),
        grid=(num_tiles,),
        in_specs=[in_spec, in_spec, in_spec, in_spec],
        out_specs=out_spec,
        compiler_params=pltpu.CompilerParams(
            # No cross-iteration carry (per-tile partial outputs), so the batch
            # axis can be sharded across TensorCores (2x on v7x megacore); it is
            # a no-op on single-core v5e/v6e.
            dimension_semantics=("parallel",),
            vmem_limit_bytes=int(vmem_limit),
        ),
        cost_estimate=cost,
    )(xoutput, xtarget, uoutput, utarget)

    # Tiny epilogue over num_tiles elements: final sum + 1/B, 1/(B*C) scaling.
    lx = -jnp.sum(parts[:, 0, 0]) / B
    lu = jnp.sum(parts[:, 1, 0]) / (B * C)
    return lx, lu


class MixMatchLoss:
    """JAX/Pallas port of the PyTorch MixMatchLoss module (forward pass)."""

    def __init__(self, rampup_length, lambda_u=75):
        self.rampup_length = rampup_length
        self.lambda_u = lambda_u
        self.current_lambda_u = lambda_u

    def linear_rampup(self, epoch):
        # Keeps the exact PyTorch semantics (including rampup_length == 0 path).
        if self.rampup_length == 0:
            return 1.0
        else:
            current = np.clip(epoch / self.rampup_length, 0.0, 1.0)
            self.current_lambda_u = float(current) * self.lambda_u

    def __call__(self, xoutput, xtarget, uoutput, utarget, epoch):
        # Scalar schedule stays in Python (no tensor compute involved).
        self.linear_rampup(epoch)
        Lx, Lu = _mixmatch_loss_terms(xoutput, xtarget, uoutput, utarget)
        return Lx, Lu, self.current_lambda_u


def _reference(xoutput, xtarget, uoutput, utarget):
    ref_lx = -jnp.mean(
        jnp.sum(jax.nn.log_softmax(xoutput.astype(jnp.float32), axis=1)
                * xtarget.astype(jnp.float32), axis=1))
    ref_lu = jnp.mean(
        (jax.nn.softmax(uoutput.astype(jnp.float32), axis=1)
         - utarget.astype(jnp.float32)) ** 2)
    return ref_lx, ref_lu


if __name__ == "__main__":
    key = jax.random.PRNGKey(0)

    # --- Small test (B=8, C=32): whole batch in one block. ---
    B, C = 8, 32
    k1, k2, k3, k4, key = jax.random.split(key, 5)
    xoutput = jax.random.normal(k1, (B, C), dtype=jnp.float32)
    uoutput = jax.random.normal(k2, (B, C), dtype=jnp.float32)
    xtarget = jax.nn.softmax(jax.random.normal(k3, (B, C), dtype=jnp.float32), axis=1)
    utarget = jax.nn.softmax(jax.random.normal(k4, (B, C), dtype=jnp.float32), axis=1)

    loss_fn = MixMatchLoss(rampup_length=16, lambda_u=75)
    epoch = 4
    Lx, Lu, lam_u = loss_fn(xoutput, xtarget, uoutput, utarget, epoch)
    Lx = jax.block_until_ready(Lx)
    Lu = jax.block_until_ready(Lu)

    ref_Lx, ref_Lu = _reference(xoutput, xtarget, uoutput, utarget)
    ref_lam = float(np.clip(epoch / 16, 0.0, 1.0)) * 75
    assert np.allclose(np.asarray(Lx), np.asarray(ref_Lx), rtol=1e-5, atol=1e-5)
    assert np.allclose(np.asarray(Lu), np.asarray(ref_Lu), rtol=1e-5, atol=1e-6)
    assert abs(lam_u - ref_lam) < 1e-9

    # --- Forced multi-tile test: exercises per-tile parallel partial sums and
    #     the masked partial last tile (B=200 with 64-row tiles -> 4 tiles). ---
    Bm, Cm = 200, 32
    k1, k2, k3, k4, key = jax.random.split(key, 5)
    xom = jax.random.normal(k1, (Bm, Cm), dtype=jnp.float32)
    uom = jax.random.normal(k2, (Bm, Cm), dtype=jnp.float32)
    xtm = jax.nn.softmax(jax.random.normal(k3, (Bm, Cm), dtype=jnp.float32), axis=1)
    utm = jax.nn.softmax(jax.random.normal(k4, (Bm, Cm), dtype=jnp.float32), axis=1)
    Lxm, Lum = _mixmatch_loss_terms(xom, xtm, uom, utm, max_tile_rows=64)
    Lxm = jax.block_until_ready(Lxm)
    Lum = jax.block_until_ready(Lum)
    ref_Lxm, ref_Lum = _reference(xom, xtm, uom, utm)
    assert np.allclose(np.asarray(Lxm), np.asarray(ref_Lxm), rtol=1e-5, atol=1e-5)
    assert np.allclose(np.asarray(Lum), np.asarray(ref_Lum), rtol=1e-5, atol=1e-6)

    # --- Larger auto-tiled test. ---
    B2, C2 = 2056, 32
    k1, k2, k3, k4, key = jax.random.split(key, 5)
    xo2 = jax.random.normal(k1, (B2, C2), dtype=jnp.float32)
    uo2 = jax.random.normal(k2, (B2, C2), dtype=jnp.float32)
    xt2 = jax.nn.softmax(jax.random.normal(k3, (B2, C2), dtype=jnp.float32), axis=1)
    ut2 = jax.nn.softmax(jax.random.normal(k4, (B2, C2), dtype=jnp.float32), axis=1)

    Lx2, Lu2, _ = loss_fn(xo2, xt2, uo2, ut2, epoch)
    Lx2 = jax.block_until_ready(Lx2)
    Lu2 = jax.block_until_ready(Lu2)
    ref_Lx2, ref_Lu2 = _reference(xo2, xt2, uo2, ut2)
    assert np.allclose(np.asarray(Lx2), np.asarray(ref_Lx2), rtol=1e-5, atol=1e-5)
    assert np.allclose(np.asarray(Lu2), np.asarray(ref_Lu2), rtol=1e-5, atol=1e-6)

    # --- bf16 inputs: kernel upcasts internally, HBM traffic is halved. ---
    Lx3, Lu3, _ = loss_fn(xo2.astype(jnp.bfloat16), xt2.astype(jnp.bfloat16),
                          uo2.astype(jnp.bfloat16), ut2.astype(jnp.bfloat16), epoch)
    Lx3 = jax.block_until_ready(Lx3)
    Lu3 = jax.block_until_ready(Lu3)
    ref_Lx3, ref_Lu3 = _reference(xo2.astype(jnp.bfloat16), xt2.astype(jnp.bfloat16),
                                  uo2.astype(jnp.bfloat16), ut2.astype(jnp.bfloat16))
    assert np.allclose(np.asarray(Lx3), np.asarray(ref_Lx3), rtol=1e-2, atol=1e-2)
    assert np.allclose(np.asarray(Lu3), np.asarray(ref_Lu3), rtol=1e-2, atol=1e-3)

    print("KERNEL_OK")
</pallas_src>

<mosaic_0001>
module attributes {stable_mosaic.version = 11 : i64} {
  func.func @_mixmatch_kernel(%arg0: i32, %arg1: memref<8x32xf32, #tpu.memory_space<vmem>>, %arg2: memref<8x32xf32, #tpu.memory_space<vmem>>, %arg3: memref<8x32xf32, #tpu.memory_space<vmem>>, %arg4: memref<8x32xf32, #tpu.memory_space<vmem>>, %arg5: memref<1x8x128xf32, #tpu.memory_space<vmem>>) attributes {dimension_semantics = [#tpu.dimension_semantics<parallel>], iteration_bounds = array<i64: 1>, scalar_prefetch = 0 : i64, scratch_operands = 0 : i64, tpu.core_type = #tpu.core_type<tc>, window_params = [{transform_indices = @transform_0, window_bounds = array<i64: 8, 32>}, {transform_indices = @transform_1, window_bounds = array<i64: 8, 32>}, {transform_indices = @transform_2, window_bounds = array<i64: 8, 32>}, {transform_indices = @transform_3, window_bounds = array<i64: 8, 32>}, {transform_indices = @transform_4, window_bounds = array<i64: 1, 8, 128>}]} {
    %c0 = arith.constant 0 : index
    %c0_0 = arith.constant 0 : index
    %0 = vector.load %arg1[%c0, %c0_0] : memref<8x32xf32, #tpu.memory_space<vmem>>, vector<8x32xf32>
    %c0_1 = arith.constant 0 : index
    %c0_2 = arith.constant 0 : index
    %1 = vector.load %arg2[%c0_1, %c0_2] : memref<8x32xf32, #tpu.memory_space<vmem>>, vector<8x32xf32>
    %cst = arith.constant dense<0xFF800000> : vector<8xf32>
    %2 = vector.multi_reduction <maximumf>, %0, %cst [1] : vector<8x32xf32> to vector<8xf32>
    %3 = vector.shape_cast %2 : vector<8xf32> to vector<8x1xf32>
    %4 = vector.broadcast %3 : vector<8x1xf32> to vector<8x32xf32>
    %5 = arith.subf %0, %4 : vector<8x32xf32>
    %6 = math.exp %5 : vector<8x32xf32>
    %cst_3 = arith.constant dense<0.000000e+00> : vector<8xf32>
    %7 = vector.multi_reduction <add>, %6, %cst_3 [1] : vector<8x32xf32> to vector<8xf32>
    %8 = vector.shape_cast %7 : vector<8xf32> to vector<8x1xf32>
    %9 = math.log %8 : vector<8x1xf32>
    %10 = vector.broadcast %9 : vector<8x1xf32> to vector<8x32xf32>
    %11 = arith.subf %5, %10 : vector<8x32xf32>
    %12 = arith.mulf %11, %1 : vector<8x32xf32>
    %c0_4 = arith.constant 0 : index
    %c0_5 = arith.constant 0 : index
    %13 = vector.load %arg3[%c0_4, %c0_5] : memref<8x32xf32, #tpu.memory_space<vmem>>, vector<8x32xf32>
    %c0_6 = arith.constant 0 : index
    %c0_7 = arith.constant 0 : index
    %14 = vector.load %arg4[%c0_6, %c0_7] : memref<8x32xf32, #tpu.memory_space<vmem>>, vector<8x32xf32>
    %cst_8 = arith.constant dense<0xFF800000> : vector<8xf32>
    %15 = vector.multi_reduction <maximumf>, %13, %cst_8 [1] : vector<8x32xf32> to vector<8xf32>
    %16 = vector.shape_cast %15 : vector<8xf32> to vector<8x1xf32>
    %17 = vector.broadcast %16 : vector<8x1xf32> to vector<8x32xf32>
    %18 = arith.subf %13, %17 : vector<8x32xf32>
    %19 = math.exp %18 : vector<8x32xf32>
    %cst_9 = arith.constant dense<0.000000e+00> : vector<8xf32>
    %20 = vector.multi_reduction <add>, %19, %cst_9 [1] : vector<8x32xf32> to vector<8xf32>
    %21 = vector.shape_cast %20 : vector<8xf32> to vector<8x1xf32>
    %22 = tpu.reciprocal %21 : vector<8x1xf32> -> vector<8x1xf32>
    %23 = vector.broadcast %22 : vector<8x1xf32> to vector<8x32xf32>
    %24 = arith.mulf %19, %23 : vector<8x32xf32>
    %25 = arith.subf %24, %14 : vector<8x32xf32>
    %26 = vector.shape_cast %12 : vector<8x32xf32> to vector<1x8x32xf32>
    %cst_10 = arith.constant dense<0.000000e+00> : vector<1xf32>
    %27 = vector.multi_reduction <add>, %26, %cst_10 [1, 2] : vector<1x8x32xf32> to vector<1xf32>
    %28 = vector.shape_cast %27 : vector<1xf32> to vector<1x1x1xf32>
    %29 = vector.extract %28[0, 0, 0] : f32 from vector<1x1x1xf32>
    %30 = arith.mulf %25, %25 : vector<8x32xf32>
    %31 = vector.shape_cast %30 : vector<8x32xf32> to vector<1x8x32xf32>
    %cst_11 = arith.constant dense<0.000000e+00> : vector<1xf32>
    %32 = vector.multi_reduction <add>, %31, %cst_11 [1, 2] : vector<1x8x32xf32> to vector<1xf32>
    %33 = vector.shape_cast %32 : vector<1xf32> to vector<1x1x1xf32>
    %34 = vector.extract %33[0, 0, 0] : f32 from vector<1x1x1xf32>
    %35 = tpu.iota {dimensions = array<i32: 0>} : vector<8x128xi32>
    %c0_i32 = arith.constant 0 : i32
    %36 = vector.broadcast %c0_i32 : i32 to vector<8x128xi32>
    %37 = arith.cmpi eq, %35, %36 : vector<8x128xi32>
    %c1_i32 = arith.constant 1 : i32
    %38 = vector.broadcast %c1_i32 : i32 to vector<8x128xi32>
    %39 = arith.cmpi eq, %35, %38 : vector<8x128xi32>
    %cst_12 = arith.constant 0.000000e+00 : f32
    %40 = vector.broadcast %34 : f32 to vector<8x128xf32>
    %41 = vector.broadcast %cst_12 : f32 to vector<8x128xf32>
    %42 = arith.select %39, %40, %41 : vector<8x128xi1>, vector<8x128xf32>
    %43 = vector.broadcast %29 : f32 to vector<8x128xf32>
    %44 = arith.select %37, %43, %42 : vector<8x128xi1>, vector<8x128xf32>
    %c0_13 = arith.constant 0 : index
    %c0_14 = arith.constant 0 : index
    %c0_15 = arith.constant 0 : index
    %45 = vector.load %arg5[%c0_13, %c0_14, %c0_15] : memref<1x8x128xf32, #tpu.memory_space<vmem>>, vector<1x8x128xf32>
    %46 = vector.shape_cast %45 : vector<1x8x128xf32> to vector<8x128xf32>
    %47 = vector.shape_cast %44 : vector<8x128xf32> to vector<1x8x128xf32>
    tpu.vector_store %arg5[%c0_13, %c0_14, %c0_15], %47 {strides = array<i32>} : memref<1x8x128xf32, #tpu.memory_space<vmem>>, vector<1x8x128xf32>,
    return
  }
  func.func @transform_0(%arg0: i32) -> (i32, i32) {
    %c0_i32 = arith.constant 0 : i32
    %c0_i32_0 = arith.constant 0 : i32
    return %arg0, %c0_i32 : i32, i32
  }
  func.func @transform_1(%arg0: i32) -> (i32, i32) {
    %c0_i32 = arith.constant 0 : i32
    %c0_i32_0 = arith.constant 0 : i32
    return %arg0, %c0_i32 : i32, i32
  }
  func.func @transform_2(%arg0: i32) -> (i32, i32) {
    %c0_i32 = arith.constant 0 : i32
    %c0_i32_0 = arith.constant 0 : i32
    return %arg0, %c0_i32 : i32, i32
  }
  func.func @transform_3(%arg0: i32) -> (i32, i32) {
    %c0_i32 = arith.constant 0 : i32
    %c0_i32_0 = arith.constant 0 : i32
    return %arg0, %c0_i32 : i32, i32
  }
  func.func @transform_4(%arg0: i32) -> (i32, i32, i32) {
    %c0_i32 = arith.constant 0 : i32
    %c0_i32_0 = arith.constant 0 : i32
    %c0_i32_1 = arith.constant 0 : i32
    return %arg0, %c0_i32, %c0_i32_0 : i32, i32, i32
  }
}

</mosaic_0001>

<bundles_post_ra>
// kernel: tpu_custom_call.1
= control target key start
LH: loop header
LB: loop body
LE: loop exit
PB: predicated region body
PF: predicated region fallthrough
CT: control target
= control target key end

     0   :  { %9 = vsyncpa [#allocation3], 0  ;;  %s318_s0 = inlined_call_operand.hbm [shape: f32[8,32], index: 0, kind: input, shape index: {}]   ;;  %s319_s1 = inlined_call_operand.hbm [shape: f32[8,32], index: 1, kind: input, shape index: {}]   ;;  %s320_s2 = inlined_call_operand.hbm [shape: f32[8,32], index: 2, kind: input, shape index: {}]   ;;  %s321_s3 = inlined_call_operand.hbm [shape: f32[8,32], index: 3, kind: input, shape index: {}]   ;;  %s322_s4 = inlined_call_operand.hbm [shape: f32[1,8,128], index: 4, kind: output, shape index: {}]  }
   0x1   :  { %10 = vsyncpa [#allocation6], 0 }
   0x2   :  { %11 = vsyncpa [#allocation9], 0 }
   0x3   :  { %12 = vsyncpa [#allocation4], 0  ;;  %s267_s15 = smov [#allocation5]   ;;  %s268_s17 = smov [#allocation2]  }
   0x4   :  { %s29_s16 = sshll.u32 %s267_s15, 4  ;;  %s19_s18 = sshll.u32 %s268_s17, 4  ;;  %s30_s16 = int_to_ptr.vmem [resolvable:$true] %s29_s16  ;;  %s20_s18 = int_to_ptr.vmem [resolvable:$true] %s19_s18 }
   0x5   :  { %s167_s19 = scalar_lea.vmem %s30_s16, 128  ;;  %p172_p1 = scmp.lt.s32.totalorder %s30_s16, %s30_s16 }
   0x6   :  { %p168_p0 = scmp.ne.s32.totalorder %s30_s16, %s167_s19  ;;  %p173_p2 = scmp.lt.s32.totalorder %s167_s19, %s167_s19 }
   0x8   :  { %p174_p3 = por %p173_p2, %p172_p1 }
   0xa   :  { %p175_p4 = pnand %p174_p3, %p168_p0 }
   0xc   :  { %178 = shalt.err (!%p175_p4)
}
   0xd   :  { %32 = dma.hbm_to_vmem [thread:$0]  %s319_s1, 128, %s30_s16, [#allocation6]  }
   0xe   :  { %s187_s22 = scalar_lea.vmem %s20_s18, 128  ;;  %p192_p6 = scmp.lt.s32.totalorder %s20_s18, %s20_s18 }
   0xf   :  { %p188_p5 = scmp.ne.s32.totalorder %s20_s18, %s187_s22  ;;  %p193_p7 = scmp.lt.s32.totalorder %s187_s22, %s187_s22 }
  0x11   :  { %p194_p8 = por %p193_p7, %p192_p6 }
  0x13   :  { %p195_p9 = pnand %p194_p8, %p188_p5 }
  0x15   :  { %198 = shalt.err (!%p195_p9)
}
  0x16   :  { %22 = dma.hbm_to_vmem [thread:$0]  %s318_s0, 128, %s20_s18, [#allocation3]  }
  0x17   :  { %s269_s25 = smov [#allocation7]   ;;  %s270_s27 = smov [#allocation8]  }
  0x18   :  { %s39_s26 = sshll.u32 %s269_s25, 4  ;;  %s49_s28 = sshll.u32 %s270_s27, 4  ;;  %s40_s26 = int_to_ptr.vmem [resolvable:$true] %s39_s26  ;;  %s50_s28 = int_to_ptr.vmem [resolvable:$true] %s49_s28 }
  0x19   :  { %s207_s29 = scalar_lea.vmem %s40_s26, 128  ;;  %p212_p11 = scmp.lt.s32.totalorder %s40_s26, %s40_s26 }
  0x1a   :  { %p208_p10 = scmp.ne.s32.totalorder %s40_s26, %s207_s29  ;;  %p213_p12 = scmp.lt.s32.totalorder %s207_s29, %s207_s29 }
  0x1c   :  { %p214_p13 = por %p213_p12, %p212_p11 }
  0x1e   :  { %p215_p0 = pnand %p214_p13, %p208_p10 }
  0x20   :  { %218 = shalt.err (!%p215_p0)
}
  0x21   :  { %42 = dma.hbm_to_vmem [thread:$0]  %s320_s2, 128, %s40_s26, [#allocation6]  }
  0x22   :  { %s227_s5 = scalar_lea.vmem %s50_s28, 128  ;;  %p232_p2 = scmp.lt.s32.totalorder %s50_s28, %s50_s28 }
  0x23   :  { %p228_p1 = scmp.ne.s32.totalorder %s50_s28, %s227_s5  ;;  %p233_p3 = scmp.lt.s32.totalorder %s227_s5, %s227_s5 }
  0x25   :  { %p234_p4 = por %p233_p3, %p232_p2 }
  0x27   :  { %p235_p5 = pnand %p234_p4, %p228_p1 }
  0x29   :  { %238 = shalt.err (!%p235_p5)
}
  0x2a   :  { %52 = dma.hbm_to_vmem [thread:$0]  %s321_s3, 128, %s50_s28, [#allocation9]  }
  0x2b   :  { %259 = dma.done.wait [#allocation3], 128  }
  0x2c   :  { %260 = vsyncadd [#allocation3], 4294967168 }
  0x2d   :  { %261 = dma.done.wait [#allocation6], 256  }
  0x2e   :  { %262 = vsyncadd [#allocation6], 4294967040 }
  0x2f   :  { %263 = dma.done.wait [#allocation9], 128  }
  0x30   :  { %264 = vsyncadd [#allocation9], 4294967168  ;;  %vm67_vm0 = vcmask 261120   ;;  %v65_v0 = vld [vmem:[#allocation2] sm:$0xff]  ;;  %v81_v1 = vld [vmem:[#allocation7] sm:$0xff]  ;;  %v116_v42 = vlaneseq  ;;  %s271_s3 = smov [#allocation10]  }
  0x31   :  { %v68_v2 = vsel %vm67_vm0, %v65_v0, -inf  ;;  %v83_v3 = vsel %vm67_vm0, %v81_v1, -inf  ;;  %v66_v18 = vld [vmem:[#allocation5] sm:$0xff]  ;;  %v82_v21 = vld [vmem:[#allocation8] sm:$0xff]  ;;  %s131_s7 = sshll.u32 %s271_s3, 4  ;;  %s132_s7 = int_to_ptr.vmem [resolvable:$true] %s131_s7 }
  0x32   :  { %69 = vmax.xlane.f32.xlu0 %v68_v2  ;;  %v117_v43 = vshrl.u32 %v116_v42, 7  ;;  %s239_s9 = scalar_lea.vmem %s132_s7, 128  ;;  %p244_p7 = scmp.lt.s32.totalorder %s132_s7, %s132_s7 }
  0x33   :  { %p240_p6 = scmp.ne.s32.totalorder %s132_s7, %s239_s9  ;;  %p245_p8 = scmp.lt.s32.totalorder %s239_s9, %s239_s9 }
  0x34   :  { %vm119_vm1 = vcmp.eq.s32.totalorder %v117_v43, 1  ;;  %vm118_vm2 = vcmp.eq.s32.totalorder %v117_v43, 0 }
  0x35   :  { %p246_p9 = por %p245_p8, %p244_p7 }
  0x36   :  { %84 = vmax.xlane.f32.xlu0 %v83_v3 }
  0x37   :  { %p247_p10 = pnand %p246_p9, %p240_p6 }
  0xbb   :  { %v70_v4 = vpop.xlane.xlu0 %69 }
  0xbc   :  { %v71_v5 = vsub.f32 %v65_v0, %v70_v4 }
  0xbe   :  { %v72_v6 = vmul.f32 1.442695, %v71_v5 }
  0xbf   :  { %v85_v7 = vpop.xlane.xlu0 %84 }
  0xc0   :  { %151 = vpow2.f32 %v72_v6  ;;  %v86_v8 = vsub.f32 %v81_v1, %v85_v7 }
  0xc2   :  { %v87_v9 = vmul.f32 1.442695, %v86_v8 }
  0xc4   :  { %153 = vpow2.f32 %v87_v9 }
  0xcd   :  { %v152_v10 = vpop.eup %151 }
  0xce   :  { %v74_v11 = vsel %vm67_vm0, %v152_v10, 0.0 }
  0xcf   :  { %75 = vadd.xlane.f32.xlu1 %v74_v11 }
  0xd1   :  { %v154_v12 = vpop.eup %153 }
  0xd2   :  { %v89_v13 = vsel %vm67_vm0, %v154_v12, 0.0 }
  0xd3   :  { %90 = vadd.xlane.f32.xlu1 %v89_v13 }
 0x158   :  { %v76_v14 = vpop.xlane.xlu1 %75 }
 0x159   :  { %155 = vlog2.f32 %v76_v14 }
 0x15c   :  { %v91_v15 = vpop.xlane.xlu1 %90 }
 0x15d   :  { %157 = vrcp.f32 %v91_v15 }
 0x166   :  { %v156_v16 = vpop.eup %155 }
 0x167   :  { %v78_v17 = vmul.f32 0.6931472, %v156_v16 }
 0x169   :  { %v79_v19 = vsub.f32 %v71_v5, %v78_v17 }
 0x16a   :  { %v158_v20 = vpop.eup %157 }
 0x16b   :  { %v80_v22 = vmul.f32 %v79_v19, %v66_v18  ;;  %v93_v23 = vmul.f32 %v158_v20, %v154_v12 }
 0x16d   :  { %v95_v24 = vsel %vm67_vm0, %v80_v22, 0.0  ;;  %v94_v25 = vsub.f32 %v93_v23, %v82_v21 }
 0x16e   :  { %96 = vadd.xlane.f32.xlu0 %v95_v24 }
 0x16f   :  { %v105_v26 = vmul.f32 %v94_v25, %v94_v25 }
 0x171   :  { %v106_v27 = vsel %vm67_vm0, %v105_v26, 0.0 }
 0x172   :  { %107 = vadd.xlane.f32.xlu1 %v106_v27 }
 0x1f7   :  { %v97_v28 = vpop.xlane.xlu0 %96 }
 0x1f8   :  { %v98_v29 = vrot.slane %v97_v28, 4 }
 0x1fa   :  { %v99_v30 = vadd.f32 %v98_v29, %v97_v28 }
 0x1fb   :  { %v108_v31 = vpop.xlane.xlu1 %107 }
 0x1fc   :  { %v100_v32 = vrot.slane %v99_v30, 2  ;;  %v109_v33 = vrot.slane %v108_v31, 4 }
 0x1fe   :  { %v110_v34 = vadd.f32 %v109_v33, %v108_v31  ;;  %v101_v35 = vadd.f32 %v100_v32, %v99_v30 }
 0x200   :  { %v111_v36 = vrot.slane %v110_v34, 2  ;;  %v102_v37 = vrot.slane %v101_v35, 1 }
 0x202   :  { %v112_v38 = vadd.f32 %v111_v36, %v110_v34  ;;  %v103_v39 = vadd.f32 %v102_v37, %v101_v35 }
 0x204   :  { %142 = vpush %v103_v39  ;;  %v113_v40 = vrot.slane %v112_v38, 1 }
 0x206   :  { %v114_v41 = vadd.f32 %v113_v40, %v112_v38 }
 0x208   :  { %144 = vpush %v114_v41 }
 0x235   :  { %s143_s2 = spop %142 }
 0x236   :  { %v122_v45 = vstv %s143_s2 }
 0x239   :  { %s145_s8 = spop %144 }
 0x23a   :  { %v120_v44 = vstv %s145_s8 }
 0x23b   :  { %v121_v46 = vsel %vm119_vm1, %v120_v44, 0.0 }
 0x23c   :  { %v123_v47 = vsel %vm118_vm2, %v122_v45, %v121_v46 }
 0x23d   :  { %124 = vst [vmem:[#allocation10] sm:$0xff] %v123_v47 }
 0x23e   :  { %250 = shalt.err (!%p247_p10)
}
 0x23f   :  { %134 = dma.vmem_to_hbm [thread:$0]  %s132_s7, 128, %s322_s4, [#allocation4]  }
 0x240   :  { %265 = dma.done.wait [#allocation4], 128  }
 0x241   :  { %266 = vsyncadd [#allocation4], 4294967168 }
 0x242   :  { %138 = vsyncpa [#allocation3], 1 }
 0x243   :  { %139 = vsyncpa [#allocation6], 1 }
 0x244   :  { %140 = vsyncpa [#allocation9], 1 }
 0x245   :  { %141 = vsyncpa [#allocation4], 1 }

</bundles_post_ra>
